<compile_context>
chip_gen: v6e
topology: v6e:2x2x1
jax: 0.10.0
libtpu: 0.0.40
codegen_flags: <defaults>
</compile_context>

<pallas_src>
import functools

import jax
import jax.numpy as jnp
from jax.experimental import pallas as pl
from jax.experimental.pallas import tpu as pltpu

GAMMA = 1e-10
LANES = 128
SUBLANES = 8
NACC = 4                        # independent accumulator slabs per shard
ROW_ALIGN = NACC * SUBLANES     # 32; also satisfies bf16 (16,128) packing
TM_MAX = 8192                   # 8192*128*4B = 4 MiB f32 block per input/buffer
VMEM_LIMIT = 48 * 1024 * 1024   # > v5e's 16 MiB scoped default, < v7x's 64 MiB


def _round_up(x, m):
    return ((x + m - 1) // m) * m


def _num_parallel_shards():
    """2 parallel shards on multi-TensorCore chips (v4/v5p megacore, v7x);
    1 on single-TC chips (v5e/v6e) so they never create phantom tiles."""
    try:
        kind = jax.devices()[0].device_kind.lower().replace(" ", "")
    except Exception:
        return 1
    return 2 if any(t in kind for t in ("v4", "v5p", "v7")) else 1


def _bpr_partial_kernel(p_ref, n_ref, acc_ref, *, tm, bps, rows_valid,
                        needs_mask):
    c = pl.program_id(0)          # parallel shard index
    i = pl.program_id(1)          # reduction step within the shard

    @pl.when(i == 0)
    def _():
        acc_ref[...] = jnp.zeros_like(acc_ref)

    lb = c * bps + i              # logical (unclamped) row-tile index

    def accumulate(mask_rows):
        diff = p_ref[...].astype(jnp.float32) - n_ref[...].astype(jnp.float32)
        if mask_rows:
            row = jax.lax.broadcasted_iota(jnp.int32, (tm, LANES), 0)
            valid = (lb * tm + row) < rows_valid
            diff = jnp.where(valid, diff, 0.0)
        # Exp-based sigmoid (matches torch.sigmoid behaviour for large |diff|).
        e = jnp.exp(-diff)
        loss = -jnp.log(GAMMA + 1.0 / (1.0 + e))
        if mask_rows:
            loss = jnp.where(valid, loss, 0.0)
        # Collapse the leading axis into NACC independent (8,128) slabs:
        # pure VPU adds with 4-way ILP; the cross-lane reduce happens once,
        # in JAX, at the very end.
        part = loss.reshape(tm // ROW_ALIGN, NACC, SUBLANES, LANES).sum(axis=0)
        acc_ref[...] += part.reshape(NACC * SUBLANES, LANES)

    if needs_mask:
        # Only the last real tile and phantom tiles contain invalid rows;
        # interior tiles take the unmasked fast path (no iota/select work).
        is_boundary = (lb + 1) * tm > rows_valid

        @pl.when(jnp.logical_not(is_boundary))
        def _():
            accumulate(False)

        @pl.when(is_boundary)
        def _():
            accumulate(True)
    else:
        accumulate(False)


def bpr_loss(p_score: jax.Array, n_score: jax.Array) -> jax.Array:
    """Pallas implementation of BPRLoss.forward (returns a scalar f32)."""
    assert p_score.shape == n_score.shape
    n_elems = int(p_score.size)
    if n_elems == 0:
        return jnp.float32(jnp.nan)

    flat_p = p_score.reshape(-1)
    flat_n = n_score.reshape(-1)

    rows = n_elems // LANES
    rem = n_elems - rows * LANES

    # Non-lane-aligned remainder (<128 elements): fold in with plain JAX
    # instead of padding both full inputs in HBM.
    if rem:
        tp = flat_p[rows * LANES:].astype(jnp.float32)
        tn = flat_n[rows * LANES:].astype(jnp.float32)
        td = tp - tn
        tail_sum = jnp.sum(-jnp.log(GAMMA + 1.0 / (1.0 + jnp.exp(-td))))
    else:
        tail_sum = jnp.float32(0.0)

    if rows == 0:
        return (tail_sum / jnp.float32(n_elems)).astype(jnp.float32)

    if rem:
        # One prefix-slice copy of the aligned part only (no padded duplicate
        # of both full arrays).  Lane-aligned inputs take the zero-copy path.
        main_p = flat_p[: rows * LANES]
        main_n = flat_n[: rows * LANES]
    else:
        main_p, main_n = flat_p, flat_n
    p2 = main_p.reshape(rows, LANES)
    n2 = main_n.reshape(rows, LANES)

    # Large fixed row tile; multiple of 32 (sub-32-bit sublane packing + NACC).
    tm = min(TM_MAX, _round_up(rows, ROW_ALIGN))
    if rows < tm:
        # Tiny input: pad rows up to one tile (array is < 4 MiB here, cheap).
        p2 = jnp.pad(p2, ((0, tm - rows), (0, 0)))
        n2 = jnp.pad(n2, ((0, tm - rows), (0, 0)))

    nb = pl.cdiv(rows, tm)                       # real row-tile count
    ncores = max(1, min(_num_parallel_shards(), nb))
    bps = pl.cdiv(nb, ncores)                    # tiles per parallel shard
    covered_rows = ncores * bps * tm
    needs_mask = covered_rows != rows            # tail rows / phantom tiles

    if nb % ncores == 0:
        in_idx = lambda c, i: (c * bps + i, 0)
    else:
        # Phantom tiles of the last shard are clamped onto the last real tile
        # (DMA stays in-bounds); their contribution is masked to zero.
        in_idx = lambda c, i: (jnp.minimum(c * bps + i, nb - 1), 0)

    kernel = functools.partial(
        _bpr_partial_kernel, tm=tm, bps=bps, rows_valid=rows,
        needs_mask=needs_mask)

    in_bytes = rows * LANES * (jnp.dtype(p_score.dtype).itemsize
                               + jnp.dtype(n_score.dtype).itemsize)
    out_bytes = ncores * NACC * SUBLANES * LANES * 4
    n_main = rows * LANES

    partials = pl.pallas_call(
        kernel,
        out_shape=jax.ShapeDtypeStruct(
            (ncores * NACC * SUBLANES, LANES), jnp.float32),
        grid_spec=pltpu.PrefetchScalarGridSpec(
            num_scalar_prefetch=0,
            grid=(ncores, bps),
            in_specs=[
                pl.BlockSpec((tm, LANES), in_idx),
                pl.BlockSpec((tm, LANES), in_idx),
            ],
            out_specs=pl.BlockSpec((NACC * SUBLANES, LANES),
                                   lambda c, i: (c, 0)),
        ),
        compiler_params=pltpu.CompilerParams(
            dimension_semantics=("parallel", "arbitrary"),
            vmem_limit_bytes=VMEM_LIMIT),
        cost_estimate=pl.CostEstimate(
            flops=8 * n_main,
            transcendentals=2 * n_main,
            bytes_accessed=in_bytes + out_bytes),
    )(p2, n2)

    total = jnp.sum(partials) + tail_sum
    return (total / jnp.float32(n_elems)).astype(jnp.float32)


def bpr_loss_ref(p_score, n_score):
    p32 = p_score.astype(jnp.float32)
    n32 = n_score.astype(jnp.float32)
    return jnp.mean(-jnp.log(GAMMA + jax.nn.sigmoid(p32 - n32)))


if __name__ == "__main__":
    key = jax.random.PRNGKey(0)
    kp, kn = jax.random.split(key)

    # BPR-style shape: (batch=8, num_items=128) positive/negative scores.
    p_score = jax.random.normal(kp, (8, 128), dtype=jnp.float32)
    n_score = jax.random.normal(kn, (8, 128), dtype=jnp.float32)
    out = jax.block_until_ready(bpr_loss(p_score, n_score))
    ref = jax.block_until_ready(bpr_loss_ref(p_score, n_score))
    assert jnp.allclose(out, ref, rtol=1e-5, atol=1e-6), (out, ref)

    # Ragged path: element count not a multiple of 128 (JAX tail + masked tile).
    kp2, kn2 = jax.random.split(kn)
    p_odd = jax.random.normal(kp2, (5, 50), dtype=jnp.float32)
    n_odd = jax.random.normal(kn2, (5, 50), dtype=jnp.float32)
    out2 = jax.block_until_ready(bpr_loss(p_odd, n_odd))
    ref2 = jax.block_until_ready(bpr_loss_ref(p_odd, n_odd))
    assert jnp.allclose(out2, ref2, rtol=1e-5, atol=1e-6), (out2, ref2)

    # bf16 inputs streamed without a wrapper upcast (kernel upcasts per tile).
    p_bf = p_score.astype(jnp.bfloat16)
    n_bf = n_score.astype(jnp.bfloat16)
    out3 = jax.block_until_ready(bpr_loss(p_bf, n_bf))
    ref3 = jax.block_until_ready(bpr_loss_ref(p_bf, n_bf))
    assert jnp.allclose(out3, ref3, rtol=1e-4, atol=1e-5), (out3, ref3)

    print("KERNEL_OK")
</pallas_src>

<mosaic_0001>
module attributes {stable_mosaic.version = 11 : i64} {
  func.func @_bpr_partial_kernel(%arg0: i32, %arg1: i32, %arg2: memref<32x128xf32, #tpu.memory_space<vmem>>, %arg3: memref<32x128xf32, #tpu.memory_space<vmem>>, %arg4: memref<32x128xf32, #tpu.memory_space<vmem>>) attributes {dimension_semantics = [#tpu.dimension_semantics<parallel>, #tpu.dimension_semantics<arbitrary>], iteration_bounds = array<i64: 1, 1>, scalar_prefetch = 0 : i64, scratch_operands = 0 : i64, tpu.core_type = #tpu.core_type<tc>, window_params = [{transform_indices = @transform_0, window_bounds = array<i64: 32, 128>}, {transform_indices = @transform_1, window_bounds = array<i64: 32, 128>}, {transform_indices = @transform_2, window_bounds = array<i64: 32, 128>}]} {
    %c0_i32 = arith.constant 0 : i32
    %0 = arith.cmpi eq, %arg1, %c0_i32 : i32
    %1 = arith.extui %0 : i1 to i32
    %c0_i32_0 = arith.constant 0 : i32
    %2 = arith.cmpi ne, %1, %c0_i32_0 : i32
    scf.if %2 {
      %cst = arith.constant 0.000000e+00 : f32
      %13 = vector.broadcast %cst : f32 to vector<32x128xf32>
      %c0 = arith.constant 0 : index
      %c0_4 = arith.constant 0 : index
      %14 = vector.load %arg4[%c0, %c0_4] : memref<32x128xf32, #tpu.memory_space<vmem>>, vector<32x128xf32>
      tpu.vector_store %arg4[%c0, %c0_4], %13 {strides = array<i32>} : memref<32x128xf32, #tpu.memory_space<vmem>>, vector<32x128xf32>,
    } else {
    }
    %c1_i32 = arith.constant 1 : i32
    %3 = arith.muli %arg0, %c1_i32 : i32
    %4 = arith.addi %3, %arg1 : i32
    %c1_i32_1 = arith.constant 1 : i32
    %5 = arith.addi %4, %c1_i32_1 : i32
    %c32_i32 = arith.constant 32 : i32
    %6 = arith.muli %5, %c32_i32 : i32
    %c8_i32 = arith.constant 8 : i32
    %7 = arith.cmpi sgt, %6, %c8_i32 : i32
    %true = arith.constant true
    %8 = arith.xori %7, %true : i1
    %9 = arith.extui %8 : i1 to i32
    %c0_i32_2 = arith.constant 0 : i32
    %10 = arith.cmpi ne, %9, %c0_i32_2 : i32
    scf.if %10 {
      %c0 = arith.constant 0 : index
      %c0_4 = arith.constant 0 : index
      %13 = vector.load %arg2[%c0, %c0_4] : memref<32x128xf32, #tpu.memory_space<vmem>>, vector<32x128xf32>
      %c0_5 = arith.constant 0 : index
      %c0_6 = arith.constant 0 : index
      %14 = vector.load %arg3[%c0_5, %c0_6] : memref<32x128xf32, #tpu.memory_space<vmem>>, vector<32x128xf32>
      %15 = arith.subf %13, %14 : vector<32x128xf32>
      %cst = arith.constant 0.000000e+00 : f32
      %16 = vector.broadcast %cst : f32 to vector<32x128xf32>
      %17 = arith.subf %16, %15 : vector<32x128xf32>
      %18 = math.exp %17 : vector<32x128xf32>
      %cst_7 = arith.constant 1.000000e+00 : f32
      %19 = vector.broadcast %cst_7 : f32 to vector<32x128xf32>
      %20 = arith.addf %19, %18 : vector<32x128xf32>
      %cst_8 = arith.constant 1.000000e+00 : f32
      %21 = vector.broadcast %cst_8 : f32 to vector<32x128xf32>
      %22 = arith.divf %21, %20 : vector<32x128xf32>
      %cst_9 = arith.constant 1.000000e-10 : f32
      %23 = vector.broadcast %cst_9 : f32 to vector<32x128xf32>
      %24 = arith.addf %23, %22 : vector<32x128xf32>
      %25 = math.log %24 : vector<32x128xf32>
      %cst_10 = arith.constant 0.000000e+00 : f32
      %26 = vector.broadcast %cst_10 : f32 to vector<32x128xf32>
      %27 = arith.subf %26, %25 : vector<32x128xf32>
      %28 = vector.shape_cast %27 : vector<32x128xf32> to vector<1x4x8x128xf32>
      %cst_11 = arith.constant dense<0.000000e+00> : vector<4x8x128xf32>
      %29 = vector.multi_reduction <add>, %28, %cst_11 [0] : vector<1x4x8x128xf32> to vector<4x8x128xf32>
      %c0_12 = arith.constant 0 : index
      %c0_13 = arith.constant 0 : index
      %30 = vector.load %arg4[%c0_12, %c0_13] : memref<32x128xf32, #tpu.memory_space<vmem>>, vector<32x128xf32>
      %31 = vector.shape_cast %29 : vector<4x8x128xf32> to vector<32x128xf32>
      %32 = arith.addf %30, %31 : vector<32x128xf32>
      %c0_14 = arith.constant 0 : index
      %c0_15 = arith.constant 0 : index
      %33 = vector.load %arg4[%c0_14, %c0_15] : memref<32x128xf32, #tpu.memory_space<vmem>>, vector<32x128xf32>
      tpu.vector_store %arg4[%c0_14, %c0_15], %32 {strides = array<i32>} : memref<32x128xf32, #tpu.memory_space<vmem>>, vector<32x128xf32>,
    } else {
    }
    %11 = arith.extui %7 : i1 to i32
    %c0_i32_3 = arith.constant 0 : i32
    %12 = arith.cmpi ne, %11, %c0_i32_3 : i32
    scf.if %12 {
      %c0 = arith.constant 0 : index
      %c0_4 = arith.constant 0 : index
      %13 = vector.load %arg2[%c0, %c0_4] : memref<32x128xf32, #tpu.memory_space<vmem>>, vector<32x128xf32>
      %c0_5 = arith.constant 0 : index
      %c0_6 = arith.constant 0 : index
      %14 = vector.load %arg3[%c0_5, %c0_6] : memref<32x128xf32, #tpu.memory_space<vmem>>, vector<32x128xf32>
      %15 = arith.subf %13, %14 : vector<32x128xf32>
      %16 = tpu.iota {dimensions = array<i32: 0>} : vector<32x128xi32>
      %c32_i32_7 = arith.constant 32 : i32
      %17 = arith.muli %4, %c32_i32_7 : i32
      %18 = vector.broadcast %17 : i32 to vector<32x128xi32>
      %19 = arith.addi %18, %16 : vector<32x128xi32>
      %c8_i32_8 = arith.constant 8 : i32
      %20 = vector.broadcast %c8_i32_8 : i32 to vector<32x128xi32>
      %21 = arith.cmpi slt, %19, %20 : vector<32x128xi32>
      %cst = arith.constant 0.000000e+00 : f32
      %22 = vector.broadcast %cst : f32 to vector<32x128xf32>
      %23 = arith.select %21, %15, %22 : vector<32x128xi1>, vector<32x128xf32>
      %cst_9 = arith.constant 0.000000e+00 : f32
      %24 = vector.broadcast %cst_9 : f32 to vector<32x128xf32>
      %25 = arith.subf %24, %23 : vector<32x128xf32>
      %26 = math.exp %25 : vector<32x128xf32>
      %cst_10 = arith.constant 1.000000e+00 : f32
      %27 = vector.broadcast %cst_10 : f32 to vector<32x128xf32>
      %28 = arith.addf %27, %26 : vector<32x128xf32>
      %cst_11 = arith.constant 1.000000e+00 : f32
      %29 = vector.broadcast %cst_11 : f32 to vector<32x128xf32>
      %30 = arith.divf %29, %28 : vector<32x128xf32>
      %cst_12 = arith.constant 1.000000e-10 : f32
      %31 = vector.broadcast %cst_12 : f32 to vector<32x128xf32>
      %32 = arith.addf %31, %30 : vector<32x128xf32>
      %33 = math.log %32 : vector<32x128xf32>
      %cst_13 = arith.constant 0.000000e+00 : f32
      %34 = vector.broadcast %cst_13 : f32 to vector<32x128xf32>
      %35 = arith.subf %34, %33 : vector<32x128xf32>
      %cst_14 = arith.constant 0.000000e+00 : f32
      %36 = vector.broadcast %cst_14 : f32 to vector<32x128xf32>
      %37 = arith.select %21, %35, %36 : vector<32x128xi1>, vector<32x128xf32>
      %38 = vector.shape_cast %37 : vector<32x128xf32> to vector<1x4x8x128xf32>
      %cst_15 = arith.constant dense<0.000000e+00> : vector<4x8x128xf32>
      %39 = vector.multi_reduction <add>, %38, %cst_15 [0] : vector<1x4x8x128xf32> to vector<4x8x128xf32>
      %c0_16 = arith.constant 0 : index
      %c0_17 = arith.constant 0 : index
      %40 = vector.load %arg4[%c0_16, %c0_17] : memref<32x128xf32, #tpu.memory_space<vmem>>, vector<32x128xf32>
      %41 = vector.shape_cast %39 : vector<4x8x128xf32> to vector<32x128xf32>
      %42 = arith.addf %40, %41 : vector<32x128xf32>
      %c0_18 = arith.constant 0 : index
      %c0_19 = arith.constant 0 : index
      %43 = vector.load %arg4[%c0_18, %c0_19] : memref<32x128xf32, #tpu.memory_space<vmem>>, vector<32x128xf32>
      tpu.vector_store %arg4[%c0_18, %c0_19], %42 {strides = array<i32>} : memref<32x128xf32, #tpu.memory_space<vmem>>, vector<32x128xf32>,
    } else {
    }
    return
  }
  func.func @transform_0(%arg0: i32, %arg1: i32) -> (i32, i32) {
    %c1_i32 = arith.constant 1 : i32
    %0 = arith.muli %arg0, %c1_i32 : i32
    %1 = arith.addi %0, %arg1 : i32
    %c0_i32 = arith.constant 0 : i32
    %c0_i32_0 = arith.constant 0 : i32
    return %1, %c0_i32 : i32, i32
  }
  func.func @transform_1(%arg0: i32, %arg1: i32) -> (i32, i32) {
    %c1_i32 = arith.constant 1 : i32
    %0 = arith.muli %arg0, %c1_i32 : i32
    %1 = arith.addi %0, %arg1 : i32
    %c0_i32 = arith.constant 0 : i32
    %c0_i32_0 = arith.constant 0 : i32
    return %1, %c0_i32 : i32, i32
  }
  func.func @transform_2(%arg0: i32, %arg1: i32) -> (i32, i32) {
    %c0_i32 = arith.constant 0 : i32
    %c0_i32_0 = arith.constant 0 : i32
    return %arg0, %c0_i32 : i32, i32
  }
}

</mosaic_0001>

<bundles_post_ra>
// kernel: tpu_custom_call.1
= control target key start
LH: loop header
LB: loop body
LE: loop exit
PB: predicated region body
PF: predicated region fallthrough
CT: control target
= control target key end

     0   :  { %7 = vsyncpa [#allocation3], 0  ;;  %s365_s0 = inlined_call_operand.hbm [shape: f32[32,128], index: 0, kind: input, shape index: {}]   ;;  %s366_s1 = inlined_call_operand.hbm [shape: f32[32,128], index: 1, kind: input, shape index: {}]   ;;  %s367_s2 = inlined_call_operand.hbm [shape: f32[32,128], index: 2, kind: output, shape index: {}]  }
   0x1   :  { %8 = vsyncpa [#allocation6], 0 }
   0x2   :  { %9 = vsyncpa [#allocation4], 0  ;;  %s326_s9 = smov [#allocation2]  }
   0x3   :  { %s19_s10 = sshll.u32 %s326_s9, 4  ;;  %s20_s10 = int_to_ptr.vmem [resolvable:$true] %s19_s10 }
   0x4   :  { %s268_s11 = scalar_lea.vmem %s20_s10, 512  ;;  %p273_p1 = scmp.lt.s32.totalorder %s20_s10, %s20_s10 }
   0x5   :  { %p269_p0 = scmp.ne.s32.totalorder %s20_s10, %s268_s11  ;;  %p274_p2 = scmp.lt.s32.totalorder %s268_s11, %s268_s11 }
   0x7   :  { %p275_p3 = por %p274_p2, %p273_p1 }
   0x9   :  { %p276_p4 = pnand %p275_p3, %p269_p0 }
   0xb   :  { %279 = shalt.err (!%p276_p4)
}
   0xc   :  { %s327_s12 = smov 128   ;;  %s328_s13 = smov 8  }
   0xd   :  { %25 = dma.hbm_to_vmem [thread:$0]  %s365_s0, 512, %s20_s10, [#allocation3], %s327_s12, %s327_s12, %s328_s13  }
   0xe   :  { %s329_s16 = smov [#allocation5]  }
   0xf   :  { %s35_s17 = sshll.u32 %s329_s16, 4  ;;  %s36_s17 = int_to_ptr.vmem [resolvable:$true] %s35_s17 }
  0x10   :  { %s288_s18 = scalar_lea.vmem %s36_s17, 512  ;;  %p293_p6 = scmp.lt.s32.totalorder %s36_s17, %s36_s17 }
  0x11   :  { %p289_p5 = scmp.ne.s32.totalorder %s36_s17, %s288_s18  ;;  %p294_p7 = scmp.lt.s32.totalorder %s288_s18, %s288_s18 }
  0x13   :  { %p295_p8 = por %p294_p7, %p293_p6 }
  0x15   :  { %p296_p9 = pnand %p295_p8, %p289_p5 }
  0x17   :  { %299 = shalt.err (!%p296_p9)
}
  0x18   :  { %41 = dma.hbm_to_vmem [thread:$0]  %s366_s1, 512, %s36_s17, [#allocation6], %s327_s12, %s327_s12, %s328_s13  }
  0x19   :  { %320 = dma.done.wait [#allocation3], 512  }
  0x1a   :  { %321 = vsyncadd [#allocation3], 4294966784 }
  0x1b   :  { %322 = dma.done.wait [#allocation6], 512  }
  0x1c   :  { %323 = vsyncadd [#allocation6], 4294966784  ;;  %v330_v0 = vmov 0.0   ;;  %v139_v1 = vld [vmem:[#allocation2] sm:$0xff]  ;;  %s331_s0 = smov [#allocation7]  }
  0x1d   :  { %227 = vst [vmem:[#allocation7 + $0x8] sm:$0xff] %v330_v0  ;;  %228 = vst [vmem:[#allocation7 + $0x10] sm:$0xff] %v330_v0  ;;  %v143_v2 = vld [vmem:[#allocation5] sm:$0xff]  ;;  %s235_s1 = sshll.u32 %s331_s0, 4  ;;  %s236_s1 = int_to_ptr.vmem [resolvable:$true] %s235_s1 }
  0x1e   :  { %229 = vst [vmem:[#allocation7 + $0x18] sm:$0xff] %v330_v0  ;;  %v147_v3 = vsub.f32 %v139_v1, %v143_v2  ;;  %s300_s21 = scalar_lea.vmem %s236_s1, 512  ;;  %p305_p11 = scmp.lt.s32.totalorder %s236_s1, %s236_s1 }
  0x1f   :  { %p301_p10 = scmp.ne.s32.totalorder %s236_s1, %s300_s21  ;;  %p306_p12 = scmp.lt.s32.totalorder %s300_s21, %s300_s21 }
  0x20   :  { %v170_v4 = vsub.f32 0.0, %v147_v3 }
  0x21   :  { %p307_p13 = por %p306_p12, %p305_p11 }
  0x22   :  { %v174_v5 = vmul.f32 1.442695, %v170_v4 }
  0x23   :  { %p308_p0 = pnand %p307_p13, %p301_p10 }
  0x24   :  { %254 = vpow2.f32 %v174_v5 }
  0x31   :  { %v255_v6 = vpop.eup %254 }
  0x32   :  { %v182_v7 = vadd.f32 1.0, %v255_v6 }
  0x34   :  { %256 = vrcp.f32 %v182_v7 }
  0x41   :  { %v257_v8 = vpop.eup %256 }
  0x42   :  { %v194_v9 = vadd.f32 1e-10, %v257_v8 }
  0x44   :  { %258 = vlog2.f32 %v194_v9 }
  0x51   :  { %v259_v10 = vpop.eup %258 }
  0x52   :  { %v199_v11 = vmul.f32 0.6931472, %v259_v10 }
  0x54   :  { %v206_v12 = vsub.f32 0.0, %v199_v11 }
  0x56   :  { %226 = vst [vmem:[#allocation7] sm:$0xff] %v206_v12 }
  0x57   :  { %311 = shalt.err (!%p308_p0)
}
  0x58   :  { %241 = dma.vmem_to_hbm [thread:$0]  %s236_s1, 512, %s367_s2, [#allocation4], %s327_s12, %s327_s12, %s328_s13  }
  0x59   :  { %324 = dma.done.wait [#allocation4], 512  }
  0x5a   :  { %325 = vsyncadd [#allocation4], 4294966784 }
  0x5b   :  { %245 = vsyncpa [#allocation3], 1 }
  0x5c   :  { %246 = vsyncpa [#allocation6], 1 }
  0x5d   :  { %247 = vsyncpa [#allocation4], 1 }

</bundles_post_ra>
